<compile_context>
chip_gen: v6e
topology: v6e:2x2x1
jax: 0.10.0
libtpu: 0.0.40
codegen_flags: <defaults>
</compile_context>

<pallas_src>
import jax
import jax.numpy as jnp
from jax.experimental import pallas as pl
from jax.experimental.pallas import tpu as pltpu


def actor_categorical_kernel(s_ref, w1_ref, b1_ref, w2t_ref, b2t_ref, ut_ref,
                             logits_ref, act_ref, logp_ref):
    # ---- actor_net: Linear -> tanh -> Linear (MXU, bf16 in / f32 accum) ----
    x = s_ref[...]                                                   # (TB, OBS) bf16
    h = jnp.tanh(
        jnp.dot(x, w1_ref[...], preferred_element_type=jnp.float32)
        + b1_ref[...]
    )                                                                # (TB, HID) f32

    # Second layer computed transposed: logits_t[a, b] = sum_k W2[k, a] * h[b, k].
    # Result (A, TILE_B): action axis on sublanes, batch on lanes, so every
    # per-row quantity below is born lane-dense.
    logits_t = jax.lax.dot_general(
        w2t_ref[...], h.astype(jnp.bfloat16),
        dimension_numbers=(((1,), (1,)), ((), ())),
        preferred_element_type=jnp.float32,
    ) + b2t_ref[...]                                                 # (A, TB) f32
    logits_ref[...] = logits_t

    # ---- Categorical(logits): log-softmax over the action (sublane) axis ----
    m = jnp.max(logits_t, axis=0, keepdims=True)                     # (1, TB)
    lse = m + jnp.log(jnp.sum(jnp.exp(logits_t - m), axis=0, keepdims=True))
    logp_t = logits_t - lse                                          # (A, TB)

    # ---- pi.sample() via Gumbel-max on precomputed uniforms ----
    u = ut_ref[...]                                                  # (A, TB) in (0,1)
    pert = logits_t - jnp.log(-jnp.log(u))
    pm = jnp.max(pert, axis=0, keepdims=True)                        # (1, TB)
    n_act = logits_t.shape[0]
    idx = jax.lax.broadcasted_iota(jnp.int32, pert.shape, 0).astype(jnp.float32)
    # argmax over the action axis with first-tie-wins semantics (f32 reductions).
    action_f = jnp.min(jnp.where(pert >= pm, idx, float(n_act)),
                       axis=0, keepdims=True)                        # (1, TB)
    act_ref[...] = action_f.astype(jnp.int32)

    # ---- get_log_prob(pi, actions): one-hot gather of logp at the action ----
    lp_sel = jnp.sum(jnp.where(idx == action_f, logp_t, 0.0),
                     axis=0, keepdims=True)                          # (1, TB)
    logp_ref[...] = lp_sel


def actor_categorical(states, w1, b1, w2, b2, uniforms, *, tile_b=512):
    """Fused ActorCategorical forward.

    Args:
      states:   (B, OBS) float observations.
      w1, b1:   first Linear params, (OBS, HID) and (HID,).
      w2, b2:   second Linear params, (HID, A) and (A,).
      uniforms: (B, A) uniforms in (0, 1) driving the Gumbel-max sampler.
      tile_b:   batch tile size (multiple of 128).

    Returns: (logits (B, A) f32, actions (B,) int32, log_probs (B,) f32).
    """
    B, obs = states.shape
    hid, n_act = w2.shape
    assert tile_b % 128 == 0
    tile_b = max(128, min(tile_b, pl.cdiv(B, 128) * 128))
    b_pad = pl.cdiv(B, tile_b) * tile_b

    # bf16 feeds for the MXU (halves the dominant HBM streams); biases stay f32.
    s_bf = jnp.pad(states.astype(jnp.bfloat16), ((0, b_pad - B), (0, 0)))
    w1_bf = w1.astype(jnp.bfloat16)
    b1_2d = b1.reshape(1, hid).astype(jnp.float32)
    w2t_bf = w2.T.astype(jnp.bfloat16)                    # (A, HID)
    b2t_2d = b2.reshape(n_act, 1).astype(jnp.float32)     # (A, 1)
    # Action-major uniforms so the sampler works directly in the lane-dense
    # layout.  TODO(synk): at scale, generate the Gumbel noise in-kernel
    # (pltpu.prng_seed + pltpu.prng_random_bits) to drop this input stream.
    u_t = jnp.pad(uniforms.astype(jnp.float32).T, ((0, 0), (0, b_pad - B)),
                  constant_values=0.5)                    # (A, B_pad)

    grid = (b_pad // tile_b,)
    logits_t, act, logp = pl.pallas_call(
        actor_categorical_kernel,
        grid=grid,
        in_specs=[
            pl.BlockSpec((tile_b, obs), lambda i: (i, 0)),    # states tile
            pl.BlockSpec((obs, hid), lambda i: (0, 0)),       # W1   (VMEM-resident)
            pl.BlockSpec((1, hid), lambda i: (0, 0)),         # b1   (VMEM-resident)
            pl.BlockSpec((n_act, hid), lambda i: (0, 0)),     # W2^T (VMEM-resident)
            pl.BlockSpec((n_act, 1), lambda i: (0, 0)),       # b2^T (VMEM-resident)
            pl.BlockSpec((n_act, tile_b), lambda i: (0, i)),  # uniforms tile
        ],
        out_specs=(
            pl.BlockSpec((n_act, tile_b), lambda i: (0, i)),  # logits^T
            pl.BlockSpec((1, tile_b), lambda i: (0, i)),      # actions
            pl.BlockSpec((1, tile_b), lambda i: (0, i)),      # log_prob(action)
        ),
        out_shape=(
            jax.ShapeDtypeStruct((n_act, b_pad), jnp.float32),
            jax.ShapeDtypeStruct((1, b_pad), jnp.int32),
            jax.ShapeDtypeStruct((1, b_pad), jnp.float32),
        ),
        compiler_params=pltpu.CompilerParams(
            dimension_semantics=("parallel",)),
    )(s_bf, w1_bf, b1_2d, w2t_bf, b2t_2d, u_t)

    # Layout plumbing back to the module's (B, A) / (B,) convention.
    return logits_t.T[:B], act[0, :B], logp[0, :B]


if __name__ == "__main__":
    # Small shapes consistent with the module: batch of observations -> logits
    # over n_actions.  B is deliberately not a multiple of the tile to exercise
    # the padding path; tile_b=128 gives a 3-step grid.
    B, OBS, HID, NACT = 300, 32, 32, 6

    key = jax.random.PRNGKey(0)
    k_s, k_w1, k_b1, k_w2, k_b2, k_u = jax.random.split(key, 6)

    states = jax.random.normal(k_s, (B, OBS), dtype=jnp.float32)
    w1 = jax.random.normal(k_w1, (OBS, HID), dtype=jnp.float32) / jnp.sqrt(OBS)
    b1 = jax.random.normal(k_b1, (HID,), dtype=jnp.float32) * 0.01
    w2 = jax.random.normal(k_w2, (HID, NACT), dtype=jnp.float32) / jnp.sqrt(HID)
    b2 = jax.random.normal(k_b2, (NACT,), dtype=jnp.float32) * 0.01
    uniforms = jax.random.uniform(k_u, (B, NACT), dtype=jnp.float32,
                                  minval=1e-6, maxval=1.0 - 1e-6)

    logits, actions, log_probs = actor_categorical(
        states, w1, b1, w2, b2, uniforms, tile_b=128)
    jax.block_until_ready((logits, actions, log_probs))

    # ---- Pure-JAX reference (same bf16 matmul path) ----
    s_bf = states.astype(jnp.bfloat16)
    w1_bf = w1.astype(jnp.bfloat16)
    w2_bf = w2.astype(jnp.bfloat16)
    h_ref = jnp.tanh(jnp.dot(s_bf, w1_bf, preferred_element_type=jnp.float32)
                     + b1[None, :])
    logits_ref = jnp.dot(h_ref.astype(jnp.bfloat16), w2_bf,
                         preferred_element_type=jnp.float32) + b2[None, :]
    actions_ref = jnp.argmax(logits_ref - jnp.log(-jnp.log(uniforms)),
                             axis=-1).astype(jnp.int32)

    # Distribution parameters (pi) match.
    assert jnp.allclose(logits, logits_ref, atol=5e-3, rtol=1e-3), "logits mismatch"
    # Sampled actions are valid and agree with the reference sampler
    # (tolerance-based: bf16 near-ties may legitimately resolve differently).
    assert bool(jnp.all((actions >= 0) & (actions < NACT))), "action out of range"
    agree = float(jnp.mean((actions == actions_ref).astype(jnp.float32)))
    assert agree >= 0.99, f"action agreement too low: {agree}"
    # get_log_prob semantics: log_probs == log_softmax(logits)[action].
    lp_self = jnp.take_along_axis(jax.nn.log_softmax(logits, axis=-1),
                                  actions[:, None].astype(jnp.int32),
                                  axis=-1)[:, 0]
    assert jnp.allclose(log_probs, lp_self, atol=1e-3), "log_prob mismatch"

    print("KERNEL_OK")
</pallas_src>

<mosaic_0001>
module attributes {stable_mosaic.version = 11 : i64} {
  func.func @actor_categorical_kernel(%arg0: i32, %arg1: memref<128x32xbf16, #tpu.memory_space<vmem>>, %arg2: memref<32x32xbf16, #tpu.memory_space<vmem>>, %arg3: memref<1x32xf32, #tpu.memory_space<vmem>>, %arg4: memref<6x32xbf16, #tpu.memory_space<vmem>>, %arg5: memref<6x1xf32, #tpu.memory_space<vmem>>, %arg6: memref<6x128xf32, #tpu.memory_space<vmem>>, %arg7: memref<6x128xf32, #tpu.memory_space<vmem>>, %arg8: memref<1x128xi32, #tpu.memory_space<vmem>>, %arg9: memref<1x128xf32, #tpu.memory_space<vmem>>) attributes {dimension_semantics = [#tpu.dimension_semantics<parallel>], iteration_bounds = array<i64: 3>, scalar_prefetch = 0 : i64, scratch_operands = 0 : i64, tpu.core_type = #tpu.core_type<tc>, window_params = [{transform_indices = @transform_0, window_bounds = array<i64: 128, 32>}, {pipeline_mode = #tpu.pipeline_mode<synchronous>, transform_indices = @transform_1, window_bounds = array<i64: 32, 32>}, {pipeline_mode = #tpu.pipeline_mode<synchronous>, transform_indices = @transform_2, window_bounds = array<i64: 1, 32>}, {pipeline_mode = #tpu.pipeline_mode<synchronous>, transform_indices = @transform_3, window_bounds = array<i64: 6, 32>}, {pipeline_mode = #tpu.pipeline_mode<synchronous>, transform_indices = @transform_4, window_bounds = array<i64: 6, 1>}, {transform_indices = @transform_5, window_bounds = array<i64: 6, 128>}, {transform_indices = @transform_6, window_bounds = array<i64: 6, 128>}, {transform_indices = @transform_7, window_bounds = array<i64: 1, 128>}, {transform_indices = @transform_8, window_bounds = array<i64: 1, 128>}]} {
    %c0 = arith.constant 0 : index
    %c0_0 = arith.constant 0 : index
    %0 = vector.load %arg1[%c0, %c0_0] : memref<128x32xbf16, #tpu.memory_space<vmem>>, vector<128x32xbf16>
    %c0_1 = arith.constant 0 : index
    %c0_2 = arith.constant 0 : index
    %1 = vector.load %arg2[%c0_1, %c0_2] : memref<32x32xbf16, #tpu.memory_space<vmem>>, vector<32x32xbf16>
    %cst = arith.constant dense<0.000000e+00> : vector<128x32xf32>
    %2 = tpu.matmul %0, %1, %cst {dimension_numbers = #tpu.dot_dimension_numbers<[1], [0], [0], [1], [0, 0, 1, 1], [], []>} : vector<128x32xbf16>, vector<32x32xbf16>, vector<128x32xf32> -> vector<128x32xf32>
    %c0_3 = arith.constant 0 : index
    %c0_4 = arith.constant 0 : index
    %3 = vector.load %arg3[%c0_3, %c0_4] : memref<1x32xf32, #tpu.memory_space<vmem>>, vector<1x32xf32>
    %4 = vector.broadcast %3 : vector<1x32xf32> to vector<128x32xf32>
    %5 = arith.addf %2, %4 : vector<128x32xf32>
    %6 = math.tanh %5 : vector<128x32xf32>
    %c0_5 = arith.constant 0 : index
    %c0_6 = arith.constant 0 : index
    %7 = vector.load %arg4[%c0_5, %c0_6] : memref<6x32xbf16, #tpu.memory_space<vmem>>, vector<6x32xbf16>
    %8 = arith.truncf %6 : vector<128x32xf32> to vector<128x32xbf16>
    %cst_7 = arith.constant dense<0.000000e+00> : vector<6x128xf32>
    %9 = tpu.matmul %7, %8, %cst_7 {dimension_numbers = #tpu.dot_dimension_numbers<[1], [1], [0], [0], [0, 0, 1, 0], [], []>} : vector<6x32xbf16>, vector<128x32xbf16>, vector<6x128xf32> -> vector<6x128xf32>
    %c0_8 = arith.constant 0 : index
    %c0_9 = arith.constant 0 : index
    %10 = vector.load %arg5[%c0_8, %c0_9] : memref<6x1xf32, #tpu.memory_space<vmem>>, vector<6x1xf32>
    %11 = vector.broadcast %10 : vector<6x1xf32> to vector<6x128xf32>
    %12 = arith.addf %9, %11 : vector<6x128xf32>
    %c0_10 = arith.constant 0 : index
    %c0_11 = arith.constant 0 : index
    %13 = vector.load %arg7[%c0_10, %c0_11] : memref<6x128xf32, #tpu.memory_space<vmem>>, vector<6x128xf32>
    tpu.vector_store %arg7[%c0_10, %c0_11], %12 {strides = array<i32>} : memref<6x128xf32, #tpu.memory_space<vmem>>, vector<6x128xf32>,
    %cst_12 = arith.constant dense<0xFF800000> : vector<128xf32>
    %14 = vector.multi_reduction <maximumf>, %12, %cst_12 [0] : vector<6x128xf32> to vector<128xf32>
    %15 = vector.shape_cast %14 : vector<128xf32> to vector<1x128xf32>
    %16 = vector.broadcast %15 : vector<1x128xf32> to vector<6x128xf32>
    %17 = arith.subf %12, %16 : vector<6x128xf32>
    %18 = math.exp %17 : vector<6x128xf32>
    %cst_13 = arith.constant dense<0.000000e+00> : vector<128xf32>
    %19 = vector.multi_reduction <add>, %18, %cst_13 [0] : vector<6x128xf32> to vector<128xf32>
    %20 = vector.shape_cast %19 : vector<128xf32> to vector<1x128xf32>
    %21 = math.log %20 : vector<1x128xf32>
    %22 = arith.addf %15, %21 : vector<1x128xf32>
    %23 = vector.broadcast %22 : vector<1x128xf32> to vector<6x128xf32>
    %24 = arith.subf %12, %23 : vector<6x128xf32>
    %c0_14 = arith.constant 0 : index
    %c0_15 = arith.constant 0 : index
    %25 = vector.load %arg6[%c0_14, %c0_15] : memref<6x128xf32, #tpu.memory_space<vmem>>, vector<6x128xf32>
    %26 = math.log %25 : vector<6x128xf32>
    %cst_16 = arith.constant 0.000000e+00 : f32
    %27 = vector.broadcast %cst_16 : f32 to vector<6x128xf32>
    %28 = arith.subf %27, %26 : vector<6x128xf32>
    %29 = math.log %28 : vector<6x128xf32>
    %30 = arith.subf %12, %29 : vector<6x128xf32>
    %cst_17 = arith.constant dense<0xFF800000> : vector<128xf32>
    %31 = vector.multi_reduction <maximumf>, %30, %cst_17 [0] : vector<6x128xf32> to vector<128xf32>
    %32 = vector.shape_cast %31 : vector<128xf32> to vector<1x128xf32>
    %33 = tpu.iota {dimensions = array<i32: 0>} : vector<6x128xi32>
    %34 = arith.sitofp %33 : vector<6x128xi32> to vector<6x128xf32>
    %35 = vector.broadcast %32 : vector<1x128xf32> to vector<6x128xf32>
    %36 = arith.cmpf oge, %30, %35 : vector<6x128xf32>
    %cst_18 = arith.constant 6.000000e+00 : f32
    %37 = vector.broadcast %cst_18 : f32 to vector<6x128xf32>
    %38 = arith.select %36, %34, %37 : vector<6x128xi1>, vector<6x128xf32>
    %cst_19 = arith.constant dense<0x7F800000> : vector<128xf32>
    %39 = vector.multi_reduction <minimumf>, %38, %cst_19 [0] : vector<6x128xf32> to vector<128xf32>
    %40 = vector.shape_cast %39 : vector<128xf32> to vector<1x128xf32>
    %41 = arith.fptosi %40 : vector<1x128xf32> to vector<1x128xi32>
    %c0_20 = arith.constant 0 : index
    %c0_21 = arith.constant 0 : index
    %42 = vector.load %arg8[%c0_20, %c0_21] : memref<1x128xi32, #tpu.memory_space<vmem>>, vector<1x128xi32>
    tpu.vector_store %arg8[%c0_20, %c0_21], %41 {strides = array<i32>} : memref<1x128xi32, #tpu.memory_space<vmem>>, vector<1x128xi32>,
    %43 = vector.broadcast %40 : vector<1x128xf32> to vector<6x128xf32>
    %44 = arith.cmpf oeq, %34, %43 : vector<6x128xf32>
    %cst_22 = arith.constant 0.000000e+00 : f32
    %45 = vector.broadcast %cst_22 : f32 to vector<6x128xf32>
    %46 = arith.select %44, %24, %45 : vector<6x128xi1>, vector<6x128xf32>
    %cst_23 = arith.constant dense<0.000000e+00> : vector<128xf32>
    %47 = vector.multi_reduction <add>, %46, %cst_23 [0] : vector<6x128xf32> to vector<128xf32>
    %48 = vector.shape_cast %47 : vector<128xf32> to vector<1x128xf32>
    %c0_24 = arith.constant 0 : index
    %c0_25 = arith.constant 0 : index
    %49 = vector.load %arg9[%c0_24, %c0_25] : memref<1x128xf32, #tpu.memory_space<vmem>>, vector<1x128xf32>
    tpu.vector_store %arg9[%c0_24, %c0_25], %48 {strides = array<i32>} : memref<1x128xf32, #tpu.memory_space<vmem>>, vector<1x128xf32>,
    return
  }
  func.func @transform_0(%arg0: i32) -> (i32, i32) {
    %c0_i32 = arith.constant 0 : i32
    %c0_i32_0 = arith.constant 0 : i32
    return %arg0, %c0_i32 : i32, i32
  }
  func.func @transform_1(%arg0: i32) -> (i32, i32) {
    %c0_i32 = arith.constant 0 : i32
    %c0_i32_0 = arith.constant 0 : i32
    %c0_i32_1 = arith.constant 0 : i32
    return %c0_i32, %c0_i32_0 : i32, i32
  }
  func.func @transform_2(%arg0: i32) -> (i32, i32) {
    %c0_i32 = arith.constant 0 : i32
    %c0_i32_0 = arith.constant 0 : i32
    %c0_i32_1 = arith.constant 0 : i32
    return %c0_i32, %c0_i32_0 : i32, i32
  }
  func.func @transform_3(%arg0: i32) -> (i32, i32) {
    %c0_i32 = arith.constant 0 : i32
    %c0_i32_0 = arith.constant 0 : i32
    %c0_i32_1 = arith.constant 0 : i32
    return %c0_i32, %c0_i32_0 : i32, i32
  }
  func.func @transform_4(%arg0: i32) -> (i32, i32) {
    %c0_i32 = arith.constant 0 : i32
    %c0_i32_0 = arith.constant 0 : i32
    %c0_i32_1 = arith.constant 0 : i32
    return %c0_i32, %c0_i32_0 : i32, i32
  }
  func.func @transform_5(%arg0: i32) -> (i32, i32) {
    %c0_i32 = arith.constant 0 : i32
    %c0_i32_0 = arith.constant 0 : i32
    return %c0_i32, %arg0 : i32, i32
  }
  func.func @transform_6(%arg0: i32) -> (i32, i32) {
    %c0_i32 = arith.constant 0 : i32
    %c0_i32_0 = arith.constant 0 : i32
    return %c0_i32, %arg0 : i32, i32
  }
  func.func @transform_7(%arg0: i32) -> (i32, i32) {
    %c0_i32 = arith.constant 0 : i32
    %c0_i32_0 = arith.constant 0 : i32
    return %c0_i32, %arg0 : i32, i32
  }
  func.func @transform_8(%arg0: i32) -> (i32, i32) {
    %c0_i32 = arith.constant 0 : i32
    %c0_i32_0 = arith.constant 0 : i32
    return %c0_i32, %arg0 : i32, i32
  }
}

</mosaic_0001>

<bundles_post_ra>
// kernel: tpu_custom_call.1
= control target key start
LH: loop header
LB: loop body
LE: loop exit
PB: predicated region body
PF: predicated region fallthrough
CT: control target
= control target key end

     0   :  { %s1491_s0 = inlined_call_operand.vmem [shape: bf16[384,32], index: 0, kind: input, shape index: {}]   ;;  %s1492_s1 = inlined_call_operand.vmem [shape: bf16[32,32], index: 1, kind: input, shape index: {}]   ;;  %s1493_s2 = inlined_call_operand.vmem [shape: f32[1,32], index: 2, kind: input, shape index: {}]   ;;  %s1494_s3 = inlined_call_operand.vmem [shape: bf16[6,32], index: 3, kind: input, shape index: {}]   ;;  %s1495_s4 = inlined_call_operand.vmem [shape: f32[6,1], index: 4, kind: input, shape index: {}]   ;;  %s1496_s5 = inlined_call_operand.vmem [shape: f32[6,384], index: 5, kind: input, shape index: {}]   ;;  %s1497_s6 = inlined_call_operand.hbm [shape: f32[6,384], index: 6, kind: output, shape index: {0}]   ;;  %s1498_s7 = inlined_call_operand.hbm [shape: s32[1,384], index: 7, kind: output, shape index: {1}]   ;;  %s1499_s8 = inlined_call_operand.hbm [shape: f32[1,384], index: 8, kind: output, shape index: {2}]  }
   0x1   :  { %1501 = sst [smem:[#allocation9_spill]] %s1491_s0 }
   0x2   :  { %14 = vsyncpa [#allocation3], 0 }
   0x3   :  { %16 = vsyncpa [#allocation3 + $0x1], 0 }
   0x4   :  { %17 = vsyncpa [#allocation5], 0 }
   0x5   :  { %19 = vsyncpa [#allocation5 + $0x1], 0  ;;  %s1239_s27 = smov 0   ;;  %s1241_s28 = smov 0  }
   0x6   :  { %s1243_s29 = smov 0   ;;  %s1245_s30 = smov 0  }
   0x7 LB: > { %s1260_s9 = sadd.s32 4294967295, %s1186_s30   ;;  %s1500_s10 = sadd.s32 4294967294, %s1186_s30   ;;  %s1186_s30 = sphi %s1245_s30, %s1509_s30   ;;  %s1182_s29 = sphi %s1243_s29, %s1508_s29   ;;  %s1178_s28 = sphi %s1241_s28, %s1507_s28   ;;  %s1174_s27 = sphi %s1239_s27, %s1506_s27  }
   0x8   : > { %s1264_s11 = sadd.s32 1, %s1186_s30   ;;  %s168_s12 = sadd.s32 1, %s1182_s29 }
   0x9   : > { %s165_s13 = ssub.s32 %s1186_s30, %s1264_s11  ;;  %p178_p0 = scmp.ne.s32.totalorder %s1182_s29, %s1178_s28 }
   0xa   : > { %p166_p1 = scmp.eq.s32.totalorder %s165_s13, 0  ;;  %p179_p2 = scmp.eq.s32.totalorder %s1260_s9, 2 }
   0xb   : > { %p184_p3 = scmp.ne.s32.totalorder %s1178_s28, %s1174_s27  ;;  %p185_p4 = scmp.eq.s32.totalorder %s1500_s10, 2 }
   0xc   : > { %s1277_s14 = scalar_select %p166_p1, %s1182_s29, %s168_s12  }
   0xd   : > { %p1279_p5 = por %p179_p2, %p178_p0  ;;  %p1283_p6 = por %p185_p4, %p184_p3 }
   0xe   : > { %p875_p7 = scmp.ge.s32.totalorder %s1186_s30, 1  ;;  %p283_p8 = scmp.lt.s32.totalorder %s1186_s30, 4 }
  0x10   : > { %p284_p9 = pnand %p875_p7, %p283_p8 }
  0x11   : > { %s1293_s19 = sshll.u32 (!%p284_p9), %s1260_s9, 4  ;;  %s1504_s0 = sld [smem:[#allocation9_spill]] (!%p284_p9) }
  0x12   : > { %287 = sbr.rel (%p284_p9) target bundleno = 642 (0x282), region = 44  ;;  %p330_p10 = scmp.lt.s32.totalorder (!%p284_p9), %s1293_s19, 47 }
  0x13   : > { %p335_p11 = scmp.lt.s32.totalorder (!%p284_p9), %s1260_s9, 2  ;;  %s1380_s12 = sand.u32 (!%p284_p9), 1, %s1178_s28  }
  0x14   : > { %s876_s13 = sshll.u32 (!%p284_p9), %s1380_s12, 3  ;;  %s901_s17 = sshll.u32 (!%p284_p9), %s1260_s9, 7 }
  0x15   : > { %s316_s18 = scalar_lea.vmem (!%p284_p9), [#allocation2], %s876_s13  ;;  %s701_s24 = scalar_lea.sflag (!%p284_p9), [#allocation3], %s1380_s12 }
  0x16   : > { %s722_s20 = sshll.u32 (!%p284_p9), %s316_s18, 4  ;;  %s1391_s20 = int_to_ptr.vmem [resolvable:$true] %s722_s20 }
  0x17   : > { %v1020_v0 = vld [vmem:[%s1492_s1 + $0x8] sm:$0xff]   ;;  %v1021_v1 = vld [vmem:[%s1492_s1] sm:$0xff]   ;;  %s331_s22 = scalar_select %p330_p10, %s1293_s19, 47  ;;  %vm419_vm0 = vcmask 261120   ;;  %v1188_v10 = vmov 0.0   ;;  %vm1189_vm1 = vmmov 0  }
  0x18   : > { %925 = vmatprep.subr.bf16.mxu0 %v1020_v0  ;;  %945 = vmatprep.subr.bf16.mxu1 %v1188_v10  ;;  %v566_v11 = vld [vmem:[%s1495_s4] sm:$0x3f]  ;;  %v1190_v12 = vmov 0   ;;  %vm640_vm2 = vcmask 1045504   ;;  %s1070_s25 = scalar_lea.vmem %s1391_s20, 128 }
  0x19   : > { %926 = vmatpush3.bf16.msra.mxu0 %v1020_v0  ;;  %s878_s23 = sshll.u32 %s331_s22, 2  ;;  %961 = vmatprep.mubr.msk.bf16.mxu1 %vm1189_vm1, %v1188_v10  ;;  %v1319_v13 = vld [vmem:[%s1493_s2] ss:$0 sm:$0xff]  ;;  %p1071_p12 = scmp.ne.s32.totalorder %s1391_s20, %s1070_s25 }
  0x1a   : > { %927 = vmatprep.subr.bf16.mxu0 %v1021_v1  ;;  %s333_s26 = scalar_lea.vmem %s1504_s0, %s878_s23  ;;  %1019 = vset.pattern.permute.xlu0 %v1190_v12 }
  0x1b   : > { %v1022_v2 = vld [vmem:[%s333_s26] sm:$0xff]   ;;  %v1023_v3 = vld [vmem:[%s333_s26 + $0x8] sm:$0xff]   ;;  %v1024_v4 = vld [vmem:[%s333_s26 + $0x10] sm:$0xff]   ;;  %569 = vperm.xlu0 %1019, %v566_v11   ;;  %s336_s22 = scalar_select %p335_p11, %s1260_s9, 2 }
  0x1c   : > { %929 = vmatprep.mubr.msk.bf16.mxu0 %vm419_vm0, %v1022_v2  ;;  %v1025_v5 = vld [vmem:[%s333_s26 + $0x18] sm:$0xff]   ;;  %v1026_v6 = vld [vmem:[%s333_s26 + $0x20] sm:$0xff]   ;;  %v1027_v7 = vld [vmem:[%s333_s26 + $0x28] sm:$0xff]   ;;  %p1072_p13 = pnand %p1071_p12, %p1279_p5 }
  0x1d   : > { %928 = vmatpush3.bf16.msra.mxu0 %v1021_v1  ;;  %v1028_v8 = vld [vmem:[%s333_s26 + $0x30] sm:$0xff]   ;;  %v1029_v9 = vld [vmem:[%s333_s26 + $0x38] sm:$0xff]   ;;  %s879_s23 = sshll.u32 %s336_s22, 3 }
  0x1e   : > { %s338_s26 = scalar_lea.vmem %s1496_s5, %s879_s23  ;;  %s1389_s23 = scalar_lea.hbm %s1497_s6, %s901_s17 }
  0x1f   : > { %p1073_p0 = pneg %p1072_p13 }
  0x20   : > { %930 = vmatmul.mubr.msk.bf16.vlgmr.msra.gmra.mxu0 %vm419_vm0, %v1023_v3 }
  0x21   : > { %933 = vmatprep.mubr.msk.bf16.mxu0 %vm419_vm0, %v1024_v4 }
  0x28   : > { %934 = vmatmul.mubr.msk.bf16.gmra.mxu0 %vm419_vm0, %v1025_v5 }
  0x29   : > { %937 = vmatprep.mubr.msk.bf16.mxu0 %vm419_vm0, %v1026_v6 }
  0x30   : > { %938 = vmatmul.mubr.msk.bf16.gmra.mxu0 %vm419_vm0, %v1027_v7 }
  0x31   : > { %941 = vmatprep.mubr.msk.bf16.mxu0 %vm419_vm0, %v1028_v8 }
  0x38   : > { %942 = vmatmul.mubr.msk.bf16.gmra.mxu0 %vm419_vm0, %v1029_v9 }
  0xe0   : > { %v931_v14 = vpop.f32.mrf.mxu0 }
  0xe1   : > { %v487_v15 = vadd.f32 %v931_v14, %v1319_v13 }
  0xe2   : > { %v478_v16 = vpop.f32.mrf.mxu0 }
  0xe3   : > { %v479_v17 = vadd.f32 %v1319_v13, %v478_v16  ;;  %1030 = vtanh.f32 %v487_v15  ;;  %v557_v15 = vld [vmem:[%s1494_s3] sm:$0x7] }
  0xe4   : > { %v932_v18 = vpop.f32.mrf.mxu0 }
  0xe5   : > { %v490_v19 = vadd.f32 %v932_v18, %v1319_v13 }
  0xe6   : > { %v481_v20 = vpop.f32.mrf.mxu0 }
  0xe7   : > { %1032 = vtanh.f32 %v490_v19  ;;  %v482_v21 = vadd.f32 %v1319_v13, %v481_v20  ;;  %v570_v20 = vpop.permute.xlu0 %569 }
  0xe8   : > { %1034 = vtanh.f32 %v479_v17  ;;  %v935_v22 = vpop.f32.mrf.mxu0 }
  0xe9   : > { %1036 = vtanh.f32 %v482_v21  ;;  %v503_v58 = vadd.f32 %v935_v22, %v1319_v13 }
  0xea   : > { %v494_v23 = vpop.f32.mrf.mxu0 }
  0xeb   : > { %v495_v0 = vadd.f32 %v1319_v13, %v494_v23 }
  0xec   : > { %v936_v24 = vpop.f32.mrf.mxu0 }
  0xed   : > { %v506_v55 = vadd.f32 %v936_v24, %v1319_v13 }
  0xee   : > { %v497_v25 = vpop.f32.mrf.mxu0 }
  0xef   : > { %v498_v61 = vadd.f32 %v1319_v13, %v497_v25 }
  0xf0   : > { %v939_v26 = vpop.f32.mrf.mxu0  ;;  %v1325_v28 = vpop.eup %1030 }
  0xf1   : > { %v519_v45 = vadd.f32 %v939_v26, %v1319_v13 }
  0xf2   : > { %v510_v27 = vpop.f32.mrf.mxu0 }
  0xf3   : > { %v511_v52 = vadd.f32 %v1319_v13, %v510_v27 }
  0xf4   : > { %v1327_v29 = vpop.eup %1032  ;;  %v940_v30 = vpop.f32.mrf.mxu0 }
  0xf5   : > { %v1329_v31 = vpop.eup %1034  ;;  %v559_v32 = vpack.c.bf16 %v1327_v29, %v1325_v28  ;;  %v522_v44 = vadd.f32 %v940_v30, %v1319_v13 }
  0xf6   : > { %v1333_v33 = vpop.eup %1036  ;;  %v513_v34 = vpop.f32.mrf.mxu0 }
  0xf7   : > { %v558_v35 = vpack.c.bf16 %v1333_v33, %v1329_v31  ;;  %v514_v49 = vadd.f32 %v1319_v13, %v513_v34 }
  0xf8   : > { %v943_v36 = vpop.f32.mrf.mxu0 }
  0xf9   : > { %v535_v37 = vadd.f32 %v943_v36, %v1319_v13  ;;  %v576_v14 = vsel %vm419_vm0, %v558_v35, 0 }
  0xfa   : > { %v526_v38 = vpop.f32.mrf.mxu0 }
  0xfb   : > { %1038 = vtanh.f32 %v535_v37  ;;  %v527_v43 = vadd.f32 %v1319_v13, %v526_v38 }
  0xfc   : > { %v944_v39 = vpop.f32.mrf.mxu0 }
  0xfd   : > { %v538_v40 = vadd.f32 %v944_v39, %v1319_v13 }
  0xfe   : > { %v529_v41 = vpop.f32.mrf.mxu0 }
  0xff   : > { %1040 = vtanh.f32 %v538_v40  ;;  %v530_v42 = vadd.f32 %v1319_v13, %v529_v41  ;;  %v579_v13 = vsel %vm419_vm0, %v559_v32, 0 }
 0x101   : > { %1042 = vtanh.f32 %v530_v42 }
 0x102   : > { %1044 = vtanh.f32 %v527_v43 }
 0x103   : > { %1046 = vtanh.f32 %v522_v44 }
 0x104   : > { %1048 = vtanh.f32 %v519_v45 }
 0x105   : > { %1050 = vtanh.f32 %v514_v49 }
 0x106   : > { %1052 = vtanh.f32 %v511_v52 }
 0x107   : > { %1054 = vtanh.f32 %v506_v55 }
 0x108   : > { %v1039_v46 = vpop.eup %1038  ;;  %1056 = vtanh.f32 %v503_v58 }
 0x109   : > { %1058 = vtanh.f32 %v498_v61 }
 0x10a   : > { %1060 = vtanh.f32 %v495_v0 }
 0x10c   : > { %v1041_v47 = vpop.eup %1040 }
 0x10d   : > { %v565_v48 = vpack.c.bf16 %v1041_v47, %v1039_v46 }
 0x10e   : > { %v1043_v51 = vpop.eup %1042 }
 0x10f   : > { %v597_v50 = vsel %vm419_vm0, %v565_v48, 0  ;;  %v1045_v53 = vpop.eup %1044 }
 0x110   : > { %946 = vmatpush3.bf16.xpose.msra.mxu1 %v597_v50  ;;  %v564_v54 = vpack.c.bf16 %v1043_v51, %v1045_v53  ;;  %v1047_v57 = vpop.eup %1046 }
 0x111   : > { %947 = vmatprep.subr.bf16.mxu1 %v1188_v10  ;;  %v1049_v59 = vpop.eup %1048 }
 0x112   : > { %v594_v56 = vsel %vm419_vm0, %v564_v54, 0  ;;  %v563_v60 = vpack.c.bf16 %v1047_v57, %v1049_v59  ;;  %v1051_v63 = vpop.eup %1050 }
 0x113   : > { %v1053_v1 = vpop.eup %1052 }
 0x114   : > { %v591_v62 = vsel %vm419_vm0, %v563_v60, 0  ;;  %v562_v2 = vpack.c.bf16 %v1051_v63, %v1053_v1  ;;  %v1055_v4 = vpop.eup %1054 }
 0x115   : > { %v1057_v5 = vpop.eup %1056 }
 0x116   : > { %v588_v3 = vsel %vm419_vm0, %v562_v2, 0  ;;  %v561_v6 = vpack.c.bf16 %v1055_v4, %v1057_v5  ;;  %v1059_v8 = vpop.eup %1058 }
 0x117   : > { %v1061_v9 = vpop.eup %1060 }
 0x118   : > { %948 = vmatpush3.bf16.xpose.msra.mxu1 %v594_v56  ;;  %v585_v7 = vsel %vm419_vm0, %v561_v6, 0  ;;  %v560_v11 = vpack.c.bf16 %v1059_v8, %v1061_v9 }
 0x119   : > { %949 = vmatprep.subr.bf16.mxu1 %v1188_v10 }
 0x11a   : > { %v582_v12 = vsel %vm419_vm0, %v560_v11, 0 }
 0x120   : > { %950 = vmatpush3.bf16.xpose.msra.mxu1 %v591_v62 }
 0x121   : > { %951 = vmatprep.subr.bf16.mxu1 %v1188_v10 }
 0x128   : > { %952 = vmatpush3.bf16.xpose.msra.mxu1 %v588_v3 }
 0x129   : > { %953 = vmatprep.subr.bf16.mxu1 %v1188_v10 }
 0x130   : > { %954 = vmatpush3.bf16.xpose.msra.mxu1 %v585_v7 }
 0x131   : > { %955 = vmatprep.subr.bf16.mxu1 %v1188_v10 }
 0x138   : > { %956 = vmatpush3.bf16.xpose.msra.mxu1 %v582_v12 }
 0x139   : > { %957 = vmatprep.subr.bf16.mxu1 %v1188_v10 }
 0x140   : > { %958 = vmatpush3.bf16.xpose.msra.mxu1 %v579_v13 }
 0x141   : > { %959 = vmatprep.subr.bf16.mxu1 %v1188_v10  ;;  %v662_v10 = vld [vmem:[%s338_s26] sm:$0x3f]  ;;  %s1191_s26 = smov [#allocation2]  }
 0x142   : > { %1062 = vlog2.f32 %v662_v10  ;;  %s1074_s13 = sshll.u32 %s1191_s26, 4  ;;  %s1075_s13 = int_to_ptr.vmem [resolvable:$false] %s1074_s13 }
 0x143   : > { %s1076_s17 = scalar_lea.vmem %s1075_s13, 256  ;;  %p1077_p1 = scmp.lt.s32.totalorder %s1391_s20, %s1075_s13 }
 0x144   : > { %p1078_p2 = scmp.lt.s32.totalorder %s1076_s17, %s1070_s25 }
 0x146   : > { %p1079_p3 = por %p1078_p2, %p1077_p1 }
 0x148   : > { %960 = vmatpush3.bf16.xpose.msra.mxu1 %v576_v14  ;;  %p1080_p4 = pnand %p1079_p3, %p1073_p0 }
 0x14f   : > { %962 = vmatmul.mubr.msk.bf16.vlgmr.msra.gmra.mxu1 %vm419_vm0, %v557_v15  ;;  %v1063_v16 = vpop.eup %1062 }
 0x150   : > { %v664_v17 = vmul.f32 0.6931472, %v1063_v16 }
 0x152   : > { %v665_v18 = vsub.f32 0.0, %v664_v17 }
 0x154   : > { %1064 = vlog2.f32 %v665_v18 }
 0x161   : > { %v1065_v19 = vpop.eup %1064 }
 0x162   : > { %v667_v21 = vmul.f32 0.6931472, %v1065_v19 }
 0x20f   : > { %v633_v22 = vpop.f32.mrf.mxu1 }
 0x210   : > { %v1384_v23 = vadd.f32 %v633_v22, %v570_v20 }
 0x211   : > { %v963_v24 = vpop.f32.mrf.mxu1 }
 0x212   : > { %v641_v25 = vsel %vm640_vm2, %v1384_v23, -inf  ;;  %v668_v26 = vsub.f32 %v1384_v23, %v667_v21  ;;  %639 = vst [vmem:[%s316_s18] sm:$0x3f] %v1384_v23 }
 0x213   : > { %v642_v27 = vrot.slane %v641_v25, 4  ;;  %v636_v28 = vpop.f32.mrf.mxu1 }
 0x214   : > { %1083 = shalt.err (!%p1080_p4)
}
 0x215   : > { %s1084_s18 = scalar_lea.hbm %s1389_s23, 128  ;;  %s1088_s26 = scalar_lea.hbm %s1497_s6, 384 }
 0x216   : > { %p1085_p7 = scmp.ne.s32.totalorder %s1389_s23, %s1084_s18  ;;  %p1089_p10 = scmp.lt.s32.totalorder %s1389_s23, %s1497_s6 }
 0x217   : > { %p1090_p11 = scmp.lt.s32.totalorder %s1088_s26, %s1084_s18 }
 0x218   : > { %p1086_p8 = pnand %p1085_p7, %p1279_p5 }
 0x219   : > { %p1091_p12 = por %p1090_p11, %p1089_p10 }
 0x21a   : > { %p1087_p9 = pneg %p1086_p8 }
 0x21c   : > { %p1092_p13 = pnand %p1091_p12, %p1087_p9 }
 0x21e   : > { %1095 = shalt.err (!%p1092_p13)
}
 0x21f   : > { %967 = dma.vmem_to_hbm [thread:$0]  (%p1279_p5), %s1391_s20, 128, %s1389_s23, %s701_s24   ;;  %v669_v29 = vsel %vm640_vm2, %v668_v26, -inf  ;;  %v643_v30 = vmax.f32 %v641_v25, %v642_v27  ;;  %v964_v32 = vpop.f32.mrf.mxu1  ;;  %v676_v33 = vlaneseq }
 0x220   : > { %v670_v31 = vrot.slane %v669_v29, 4  ;;  %s705_s0 = sand.u32 1, %s1260_s9   ;;  %s322_s10 = scalar_lea.vmem [#allocation4], %s1380_s12 }
 0x221   : > { %v644_v34 = vrot.slane %v643_v30, 2  ;;  %v1419_v38 = vshrl.u32 %v676_v33, 7  ;;  %s735_s20 = sshll.u32 %s322_s10, 4  ;;  %s1431_s25 = scalar_lea.hbm %s1498_s7, %s1293_s19  ;;  %s736_s20 = int_to_ptr.vmem [resolvable:$true] %s735_s20 }
 0x222   : > { %v671_v35 = vmax.f32 %v669_v29, %v670_v31  ;;  %s1433_s13 = scalar_lea.sflag [#allocation5], %s705_s0  ;;  %s1096_s17 = scalar_lea.vmem %s736_s20, 16 }
 0x223   : > { %v645_v36 = vmax.f32 %v643_v30, %v644_v34  ;;  %v678_v43 = vcvt.s32.f32 %v1419_v38  ;;  %p1097_p0 = scmp.ne.s32.totalorder %s736_s20, %s1096_s17  ;;  %s1192_s9 = smov [#allocation4]  }
 0x224   : > { %v672_v37 = vrot.slane %v671_v35, 2  ;;  %s1100_s18 = sshll.u32 %s1192_s9, 4  ;;  %s1101_s18 = int_to_ptr.vmem [resolvable:$false] %s1100_s18 }
 0x225   : > { %v646_v39 = vrot.slane %v645_v36, 1  ;;  %p1098_p1 = pnand %p1097_p0, %p1279_p5  ;;  %s1102_s21 = scalar_lea.vmem %s1101_s18, 32 }
 0x226   : > { %v673_v40 = vmax.f32 %v671_v35, %v672_v37  ;;  %p1103_p3 = scmp.lt.s32.totalorder %s736_s20, %s1101_s18  ;;  %p1104_p4 = scmp.lt.s32.totalorder %s1102_s21, %s1096_s17 }
 0x227   : > { %v647_v41 = vmax.f32 %v645_v36, %v646_v39  ;;  %p1099_p2 = pneg %p1098_p1 }
 0x228   : > { %v674_v42 = vrot.slane %v673_v40, 1  ;;  %p1105_p7 = por %p1104_p4, %p1103_p3 }
 0x229   : > { %v648_v44 = vsub.f32 %v1384_v23, %v647_v41 }
 0x22a   : > { %v675_v45 = vmax.f32 %v673_v40, %v674_v42  ;;  %p1106_p8 = pnand %p1105_p7, %p1099_p2 }
 0x22b   : > { %v649_v46 = vmul.f32 1.442695, %v648_v44 }
 0x22c   : > { %vm679_vm3 = vcmp.ge.f32.partialorder %v668_v26, %v675_v45 }
 0x22d   : > { %v680_v47 = vsel %vm679_vm3, %v678_v43, 6.0  ;;  %1066 = vpow2.f32 %v649_v46 }
 0x22e   : > { %v681_v48 = vsel %vm640_vm2, %v680_v47, inf }
 0x22f   : > { %v682_v49 = vrot.slane %v681_v48, 4 }
 0x231   : > { %v683_v50 = vmin.f32 %v681_v48, %v682_v49 }
 0x233   : > { %v684_v51 = vrot.slane %v683_v50, 2 }
 0x235   : > { %v685_v52 = vmin.f32 %v683_v50, %v684_v51 }
 0x237   : > { %v686_v53 = vrot.slane %v685_v52, 1 }
 0x239   : > { %v687_v54 = vmin.f32 %v685_v52, %v686_v53 }
 0x23a   : > { %v1067_v55 = vpop.eup %1066 }
 0x23b   : > { %v965_v56 = vtrunc.f32 %v687_v54  ;;  %v651_v57 = vsel %vm640_vm2, %v1067_v55, 0.0 }
 0x23c   : > { %v652_v58 = vrot.slane %v651_v57, 4 }
 0x23d   : > { %v966_v59 = vcvt.f32.s32 %v965_v56 }
 0x23e   : > { %v653_v60 = vadd.f32 %v652_v58, %v651_v57 }
 0x23f   : > { %689 = vst [vmem:[%s322_s10] sm:$0x1] %v966_v59 }
 0x240   : > { %1109 = shalt.err (!%p1106_p8)
}
 0x241   : > { %s1110_s22 = scalar_lea.hbm %s1431_s25, 16  ;;  %s1114_s10 = scalar_lea.hbm %s1498_s7, 48 }
 0x242   : > { %p1111_p9 = scmp.ne.s32.totalorder %s1431_s25, %s1110_s22  ;;  %p1115_p12 = scmp.lt.s32.totalorder %s1431_s25, %s1498_s7 }
 0x243   : > { %p1116_p13 = scmp.lt.s32.totalorder %s1114_s10, %s1110_s22 }
 0x244   : > { %p1112_p10 = pnand %p1111_p9, %p1279_p5 }
 0x245   : > { %p1117_p0 = por %p1116_p13, %p1115_p12 }
 0x246   : > { %p1113_p11 = pneg %p1112_p10 }
 0x248   : > { %p1118_p1 = pnand %p1117_p0, %p1113_p11 }
 0x24a   : > { %1121 = shalt.err (!%p1118_p1)
}
 0x24b   : > { %968 = dma.vmem_to_hbm [thread:$0]  (%p1279_p5), %s736_s20, 16, %s1431_s25, %s1433_s13   ;;  %v654_v61 = vrot.slane %v653_v60, 2  ;;  %vm690_vm4 = vcmp.eq.f32.partialorder %v678_v43, %v687_v54 }
 0x24c   : > { %s328_s20 = scalar_lea.vmem [#allocation6], %s1380_s12  ;;  %s746_s18 = scalar_lea.hbm %s1499_s8, %s1293_s19 }
 0x24d   : > { %v655_v62 = vadd.f32 %v654_v61, %v653_v60  ;;  %s748_s25 = sshll.u32 %s328_s20, 4  ;;  %s1193_s22 = smov [#allocation6]   ;;  %s749_s25 = int_to_ptr.vmem [resolvable:$true] %s748_s25 }
 0x24e   : > { %s1122_s21 = scalar_lea.vmem %s749_s25, 16  ;;  %s1126_s26 = sshll.u32 %s1193_s22, 4  ;;  %s1127_s26 = int_to_ptr.vmem [resolvable:$false] %s1126_s26 }
 0x24f   : > { %v656_v63 = vrot.slane %v655_v62, 1  ;;  %p1123_p2 = scmp.ne.s32.totalorder %s749_s25, %s1122_s21  ;;  %s1128_s0 = scalar_lea.vmem %s1127_s26, 32 }
 0x250   : > { %p1129_p7 = scmp.lt.s32.totalorder %s749_s25, %s1127_s26  ;;  %p1130_p8 = scmp.lt.s32.totalorder %s1128_s0, %s1122_s21 }
 0x251   : > { %v657_v0 = vadd.f32 %v656_v63, %v655_v62  ;;  %p1124_p3 = pnand %p1123_p2, %p1279_p5 }
 0x252   : > { %p1131_p9 = por %p1130_p8, %p1129_p7 }
 0x253   : > { %1068 = vlog2.f32 %v657_v0  ;;  %p1125_p4 = pneg %p1124_p3 }
 0x255   : > { %p1132_p10 = pnand %p1131_p9, %p1125_p4 }
 0x260   : > { %v1069_v1 = vpop.eup %1068 }
 0x261   : > { %v659_v2 = vmul.f32 0.6931472, %v1069_v1 }
 0x263   : > { %v660_v3 = vadd.f32 %v659_v2, %v647_v41 }
 0x265   : > { %v661_v4 = vsub.f32 %v1384_v23, %v660_v3 }
 0x267   : > { %v691_v5 = vsel %vm690_vm4, %v661_v4, 0.0 }
 0x268   : > { %v692_v6 = vsel %vm640_vm2, %v691_v5, 0.0 }
 0x269   : > { %v693_v7 = vrot.slane %v692_v6, 4 }
 0x26b   : > { %v694_v8 = vadd.f32 %v693_v7, %v692_v6 }
 0x26d   : > { %v695_v9 = vrot.slane %v694_v8, 2 }
 0x26f   : > { %v696_v11 = vadd.f32 %v695_v9, %v694_v8 }
 0x271   : > { %v697_v12 = vrot.slane %v696_v11, 1 }
 0x273   : > { %v698_v13 = vadd.f32 %v697_v12, %v696_v11 }
 0x275   : > { %699 = vst [vmem:[%s328_s20] sm:$0x1] %v698_v13 }
 0x276   : > { %1135 = shalt.err (!%p1132_p10)
}
 0x277   : > { %s1136_s12 = scalar_lea.hbm %s746_s18, 16  ;;  %s1140_s23 = scalar_lea.hbm %s1499_s8, 48 }
 0x278   : > { %p1137_p11 = scmp.ne.s32.totalorder %s746_s18, %s1136_s12  ;;  %p1141_p0 = scmp.lt.s32.totalorder %s746_s18, %s1499_s8 }
 0x279   : > { %p1142_p1 = scmp.lt.s32.totalorder %s1140_s23, %s1136_s12 }
 0x27a   : > { %p1138_p12 = pnand %p1137_p11, %p1279_p5 }
 0x27b   : > { %p1143_p2 = por %p1142_p1, %p1141_p0 }
 0x27c   : > { %p1139_p13 = pneg %p1138_p12 }
 0x27e   : > { %p1144_p3 = pnand %p1143_p2, %p1139_p13 }
 0x280   : > { %1147 = shalt.err (!%p1144_p3)
}
 0x281   : > { %969 = dma.vmem_to_hbm [thread:$0]  (%p1279_p5), %s749_s25, 16, %s746_s18, %s1433_s13  }
 0x282 PF: > { %p983_p4 = scmp.ge.s32.totalorder %s1186_s30, 2  ;;  %s760_s17 = sand.u32 1, %s1174_s27  }
 0x283   : > { %s761_s9 = scalar_lea.sflag [#allocation3], %s760_s17 }
 0x284   : > { %p974_p7 = pnand %p983_p4, %p1283_p6 }
 0x286   : > { %p975_p8 = pneg %p974_p7 }
 0x288   : > { %1165 = dma.done.wait (%p975_p8), %s761_s9, 128  }
 0x289   : > { %1167 = vsyncadd (%p975_p8), %s761_s9, 4294967168  ;;  %s1505_s21 = sadd.s32 4294967294, %s1186_s30  }
 0x28a   : > { %s769_s22 = sand.u32 1, %s1505_s21  }
 0x28b   : > { %s770_s26 = scalar_lea.sflag [#allocation5], %s769_s22 }
 0x28c   : > { %1169 = dma.done.wait (%p975_p8), %s770_s26, 32  }
 0x28d   : > { %1171 = vsyncadd (%p975_p8), %s770_s26, 4294967264  ;;  %p22_p5 = scmp.ge.s32.totalorder %s1264_s11, 5   ;;  %s1506_s27 = smov %s1178_s28 }
 0x28e   : > { %s1507_s28 = smov %s1182_s29  ;;  %s1508_s29 = smov %s1277_s14 }
 0x28f   : > { %s1509_s30 = smov %s1264_s11  ;;  %24 = sbr.rel (!%p22_p5) target bundleno = 7 (0x7), region = 114 }
 0x294   :  { %782 = vsyncpa [#allocation3], 1 }
 0x295   :  { %784 = vsyncpa [#allocation3 + $0x1], 1 }
 0x296   :  { %785 = vsyncpa [#allocation5], 1 }
 0x297   :  { %787 = vsyncpa [#allocation5 + $0x1], 1 }

</bundles_post_ra>
